<compile_context>
chip_gen: v7x
topology: tpu7x:2x2x1
jax: 0.10.0
libtpu: 0.0.40
codegen_flags: <defaults>
</compile_context>

<pallas_src>
import functools

import jax
import jax.numpy as jnp
from jax import lax
from jax.experimental import pallas as pl
from jax.experimental.pallas import tpu as pltpu

OUT_DIM = 16          # per-backbone feature dim (conv2 out channels)
CONV1_DIM = 8         # per-backbone conv1 out channels
NUM_BACKBONES = 2
NB_CLASSES = 10
NB_OLD_CLASSES = 5


# ----------------------------------------------------------------------------
# The fused Pallas kernel (whole forward pass; Bt images per grid step)
# ----------------------------------------------------------------------------
def _foster_kernel(x_ref, w1_ref, b1_ref, maskf_ref, w2_ref, b2_ref,
                   gsel_ref, wh_ref, bh_ref, out_ref, *, bt, hp, wp):
    """x_ref    : (4*q, 9*cin) bf16  conv1 im2col, rows ordered (par_i, par_j, b, ho, wo)
       w1_ref   : (9*cin, c1)  bf16  conv1 weights, both backbones stacked on cout
       maskf_ref: (q, 9*c1)    f32   zero-padding mask for the conv2 im2col taps
       w2_ref   : (9*c1, c2)   bf16  conv2 weights, block-diagonal across backbones
       gsel_ref : (bt, q)      f32   per-image global-average-pool selector
       wh_ref   : (c2, outw)   f32   fused [I | fc.T | fe_fc.T | oldfc.T] head
       out_ref  : (bt, outw)   f32   [features | logits | fe_logits | old_logits]
    """
    q = bt * hp * wp

    # ---- conv1 (3x3, pad 1): single K-folded GEMM, bf16 in / f32 acc --------
    h1 = jnp.dot(x_ref[...], w1_ref[...], preferred_element_type=jnp.float32)
    h1 = jnp.maximum(h1 + b1_ref[...], 0.0)                         # (4q, c1)

    # ---- 2x2 average pool: parity groups are contiguous 8-aligned row blocks
    p = 0.25 * (h1[0:q] + h1[q:2 * q] + h1[2 * q:3 * q] + h1[3 * q:4 * q])

    # ---- conv2 (3x3, pad 1): im2col-on-K from 9 sublane rolls + one masked
    # ---- lane-concat, then a single GEMM with K = 9*c1 ----------------------
    taps = []
    for kh in range(3):
        for kw in range(3):
            s = (kh - 1) * wp + (kw - 1)
            taps.append(p if s == 0 else pltpu.roll(p, shift=(-s) % q, axis=0))
    im2 = (jnp.concatenate(taps, axis=1) * maskf_ref[...]).astype(jnp.bfloat16)
    h2 = jnp.dot(im2, w2_ref[...], preferred_element_type=jnp.float32)
    h2 = jnp.maximum(h2 + b2_ref[...], 0.0)                         # (q, c2)

    # ---- global average pool: tiny per-image selection GEMM (constant input)
    feats = jnp.dot(gsel_ref[...], h2, preferred_element_type=jnp.float32)  # (bt, c2)

    # ---- fused [features | fc | fe_fc | oldfc]: one GEMM, one 64-lane store -
    out_ref[...] = (jnp.dot(feats, wh_ref[...], preferred_element_type=jnp.float32)
                    + bh_ref[...])


# ----------------------------------------------------------------------------
# Wrapper-side packing (one-time layout plumbing in plain JAX)
# ----------------------------------------------------------------------------
def _choose_bt(n):
    """Images per grid step; keep >= 2 grid steps when possible (v7x megacore)."""
    for bt in (8, 4, 2):
        if n % bt == 0 and n // bt >= 2:
            return bt
    return 1


def _prep_input(x_nchw, g, bt, hp, wp):
    """NCHW -> (G, 4*Bt*Hp*Wp, 9*cin) bf16 conv1 im2col, rows grouped by the
    2x2-pool pixel parity so the in-kernel pool is three aligned adds."""
    n, cin, h, w = x_nchw.shape
    xh = jnp.transpose(x_nchw, (0, 2, 3, 1)).astype(jnp.float32)     # (n,h,w,cin)
    xp = jnp.pad(xh, ((0, 0), (1, 1), (1, 1), (0, 0)))
    taps = [xp[:, kh:kh + h, kw:kw + w, :] for kh in range(3) for kw in range(3)]
    col = jnp.concatenate(taps, axis=-1)                              # (n,h,w,9cin)
    col = col.reshape(g, bt, hp, 2, wp, 2, 9 * cin)                   # h=(ho,i) w=(wo,j)
    col = jnp.transpose(col, (0, 3, 5, 1, 2, 4, 6))                   # (g,i,j,b,ho,wo,K)
    return col.reshape(g, 4 * bt * hp * wp, 9 * cin).astype(jnp.bfloat16)


def _make_consts(bt, hp, wp, c1):
    """Image-independent constants: conv2 tap zero-pad mask and GAP selector."""
    q = bt * hp * wp
    r = jnp.arange(q)
    ho = (r // wp) % hp
    wo = r % wp
    cols = []
    for kh in range(3):
        for kw in range(3):
            dh, dw = kh - 1, kw - 1
            cols.append((ho + dh >= 0) & (ho + dh < hp)
                        & (wo + dw >= 0) & (wo + dw < wp))
    mask9 = jnp.stack(cols, axis=1).astype(jnp.float32)               # (q, 9)
    maskf = jnp.repeat(mask9, c1, axis=1)                             # (q, 9*c1)
    gsel = ((r // (hp * wp))[None, :] == jnp.arange(bt)[:, None])
    gsel = gsel.astype(jnp.float32) / float(hp * wp)                  # (bt, q)
    return maskf, gsel


def _pack_params(params):
    bbs = params['backbones']
    nb = len(bbs)
    cin = bbs[0]['conv1_w'].shape[1]
    c1p = bbs[0]['conv1_w'].shape[0]
    c2p = bbs[0]['conv2_w'].shape[0]
    c1, c2 = c1p * nb, c2p * nb

    # conv1: both backbones share the input -> stack weights along cout, K=(tap,cin).
    w1 = jnp.concatenate([bp['conv1_w'] for bp in bbs], axis=0)       # (c1,cin,3,3)
    w1 = jnp.transpose(w1, (2, 3, 1, 0)).reshape(9 * cin, c1).astype(jnp.bfloat16)
    b1 = jnp.concatenate([bp['conv1_b'] for bp in bbs]).reshape(1, c1).astype(jnp.float32)

    # conv2: block-diagonal across backbones, K ordered (tap, c1 channel).
    w2 = jnp.zeros((9, c1, c2), jnp.float32)
    for i, bp in enumerate(bbs):
        blk = jnp.transpose(bp['conv2_w'], (2, 3, 1, 0)).reshape(9, c1p, c2p)
        w2 = w2.at[:, i * c1p:(i + 1) * c1p, i * c2p:(i + 1) * c2p].set(blk)
    w2 = w2.reshape(9 * c1, c2).astype(jnp.bfloat16)
    b2 = jnp.concatenate([bp['conv2_b'] for bp in bbs]).reshape(1, c2).astype(jnp.float32)

    # heads: features passthrough (identity) + fc + fe_fc (+ oldfc) in one GEMM,
    # padded to a 64-lane output so the per-step store is a single dense slab.
    n_fc = params['fc_w'].shape[0]
    n_fe = params['fe_fc_w'].shape[0]
    has_old = params.get('oldfc_w') is not None
    n_old = params['oldfc_w'].shape[0] if has_old else 0
    cols = [jnp.eye(c2, dtype=jnp.float32), params['fc_w'].T.astype(jnp.float32)]
    bias = [jnp.zeros((c2,), jnp.float32), params['fc_b'].astype(jnp.float32)]
    fe = jnp.zeros((c2, n_fe), jnp.float32).at[c2 - c2p:, :].set(params['fe_fc_w'].T)
    cols.append(fe)
    bias.append(params['fe_fc_b'].astype(jnp.float32))
    if has_old:
        old = jnp.zeros((c2, n_old), jnp.float32).at[:c2 - c2p, :].set(params['oldfc_w'].T)
        cols.append(old)
        bias.append(params['oldfc_b'].astype(jnp.float32))
    wh = jnp.concatenate(cols, axis=1)
    bh = jnp.concatenate(bias).reshape(1, -1)
    outw = -(-wh.shape[1] // 64) * 64
    wh = jnp.pad(wh, ((0, 0), (0, outw - wh.shape[1])))
    bh = jnp.pad(bh, ((0, 0), (0, outw - bh.shape[1])))

    meta = dict(c1=c1, c2=c2, n_fc=n_fc, n_fe=n_fe, n_old=n_old,
                has_old=has_old, outw=outw)
    return (w1, b1, w2, b2, wh, bh), meta


def foster_forward(params, x_nchw):
    """Mirrors FOSTERNet.forward with one fused pallas_call."""
    n, cin, height, width = x_nchw.shape
    assert height % 2 == 0 and width % 2 == 0
    hp, wp = height // 2, width // 2
    bt = _choose_bt(n)
    g = n // bt
    q = bt * hp * wp

    (w1, b1, w2, b2, wh, bh), meta = _pack_params(params)
    c1, c2, outw = meta['c1'], meta['c2'], meta['outw']
    k1, k2 = w1.shape[0], w2.shape[0]

    x_in = _prep_input(x_nchw, g, bt, hp, wp)
    maskf, gsel = _make_consts(bt, hp, wp, c1)

    kernel = functools.partial(_foster_kernel, bt=bt, hp=hp, wp=wp)
    const = lambda i: (0, 0)
    out = pl.pallas_call(
        kernel,
        grid=(g,),
        in_specs=[
            pl.BlockSpec((None, 4 * q, k1), lambda i: (i, 0, 0)),
            pl.BlockSpec((k1, c1), const),
            pl.BlockSpec((1, c1), const),
            pl.BlockSpec((q, k2), const),
            pl.BlockSpec((k2, c2), const),
            pl.BlockSpec((1, c2), const),
            pl.BlockSpec((bt, q), const),
            pl.BlockSpec((c2, outw), const),
            pl.BlockSpec((1, outw), const),
        ],
        out_specs=pl.BlockSpec((None, bt, outw), lambda i: (i, 0, 0)),
        out_shape=jax.ShapeDtypeStruct((g, bt, outw), jnp.float32),
        compiler_params=pltpu.CompilerParams(
            dimension_semantics=("parallel",)),
    )(x_in, w1, b1, maskf, w2, b2, gsel, wh, bh)

    out = out.reshape(n, outw)
    o = c2
    features = out[:, :c2]
    logits = out[:, o:o + meta['n_fc']]; o += meta['n_fc']
    fe_logits = out[:, o:o + meta['n_fe']]; o += meta['n_fe']
    res = {'logits': logits, 'fe_logits': fe_logits,
           'features': features, 'eval_logits': logits}
    if meta['has_old']:
        res['old_logits'] = out[:, o:o + meta['n_old']]
    return res


# ----------------------------------------------------------------------------
# Parameters + pure-JAX reference (for a correctness sanity check)
# ----------------------------------------------------------------------------
def init_params(key, cin=4):
    # TODO(synk): update_fc / weight_align / copy_fc / load_checkpoint / freeze are
    # training-time state mutations with no kernel equivalent; only the frozen
    # second-task forward state exists here.
    keys = jax.random.split(key, 8)

    def backbone(k):
        k1, k2, k3, k4 = jax.random.split(k, 4)
        return {
            'conv1_w': jax.random.normal(k1, (CONV1_DIM, cin, 3, 3), jnp.float32) * 0.1,
            'conv1_b': jax.random.normal(k2, (CONV1_DIM,), jnp.float32) * 0.01,
            'conv2_w': jax.random.normal(k3, (OUT_DIM, CONV1_DIM, 3, 3), jnp.float32) * 0.1,
            'conv2_b': jax.random.normal(k4, (OUT_DIM,), jnp.float32) * 0.01,
        }

    feature_dim = NUM_BACKBONES * OUT_DIM
    return {
        'backbones': [backbone(keys[0]), backbone(keys[1])],
        'fc_w': jax.random.normal(keys[2], (NB_CLASSES, feature_dim), jnp.float32) * 0.05,
        'fc_b': jax.random.normal(keys[3], (NB_CLASSES,), jnp.float32) * 0.01,
        'fe_fc_w': jax.random.normal(keys[4], (NB_CLASSES, OUT_DIM), jnp.float32) * 0.05,
        'fe_fc_b': jax.random.normal(keys[5], (NB_CLASSES,), jnp.float32) * 0.01,
        'oldfc_w': jax.random.normal(keys[6], (NB_OLD_CLASSES, OUT_DIM), jnp.float32) * 0.05,
        'oldfc_b': jax.random.normal(keys[7], (NB_OLD_CLASSES,), jnp.float32) * 0.01,
    }


def _reference_forward(params, x_nchw):
    """Plain-JAX reference mirroring the PyTorch module (for validation)."""
    x = jnp.transpose(x_nchw, (0, 2, 3, 1))
    feats = []
    for bp in params['backbones']:
        w1 = jnp.transpose(bp['conv1_w'], (2, 3, 1, 0))
        h = lax.conv_general_dilated(x, w1, (1, 1), 'SAME',
                                     dimension_numbers=('NHWC', 'HWIO', 'NHWC'))
        h = jnp.maximum(h + bp['conv1_b'], 0.0)
        n, hh, ww, c = h.shape
        h = h.reshape(n, hh // 2, 2, ww // 2, 2, c).mean(axis=(2, 4))
        w2 = jnp.transpose(bp['conv2_w'], (2, 3, 1, 0))
        h = lax.conv_general_dilated(h, w2, (1, 1), 'SAME',
                                     dimension_numbers=('NHWC', 'HWIO', 'NHWC'))
        h = jnp.maximum(h + bp['conv2_b'], 0.0)
        feats.append(h.mean(axis=(1, 2)))
    features = jnp.concatenate(feats, axis=1)
    logits = features @ params['fc_w'].T + params['fc_b']
    out = {'logits': logits,
           'fe_logits': features[:, -OUT_DIM:] @ params['fe_fc_w'].T + params['fe_fc_b'],
           'features': features, 'eval_logits': logits}
    if params.get('oldfc_w') is not None:
        out['old_logits'] = (features[:, :-OUT_DIM] @ params['oldfc_w'].T
                             + params['oldfc_b'])
    return out


if __name__ == "__main__":
    key = jax.random.PRNGKey(0)
    pkey, xkey = jax.random.split(key)
    params = init_params(pkey)
    x = jax.random.normal(xkey, (2, 4, 16, 16), jnp.float32)   # NCHW, like PyTorch

    fwd = jax.jit(foster_forward)
    out = fwd(params, x)
    out = jax.tree_util.tree_map(jax.block_until_ready, out)

    ref = _reference_forward(params, x)
    for k in ('logits', 'fe_logits', 'old_logits', 'features', 'eval_logits'):
        assert out[k].shape == ref[k].shape, k
        assert bool(jnp.allclose(out[k], ref[k], atol=2e-2, rtol=2e-2)), k

    assert out['logits'].shape == (2, NB_CLASSES)
    assert out['fe_logits'].shape == (2, NB_CLASSES)
    assert out['old_logits'].shape == (2, NB_OLD_CLASSES)
    assert out['features'].shape == (2, NUM_BACKBONES * OUT_DIM)
    assert out['eval_logits'].shape == (2, NB_CLASSES)
    print("KERNEL_OK")
</pallas_src>

<mosaic_0001>
module attributes {stable_mosaic.version = 11 : i64} {
  func.func @_foster_kernel(%arg0: i32, %arg1: memref<1x256x36xbf16, #tpu.memory_space<vmem>>, %arg2: memref<36x16xbf16, #tpu.memory_space<vmem>>, %arg3: memref<1x16xf32, #tpu.memory_space<vmem>>, %arg4: memref<64x144xf32, #tpu.memory_space<vmem>>, %arg5: memref<144x32xbf16, #tpu.memory_space<vmem>>, %arg6: memref<1x32xf32, #tpu.memory_space<vmem>>, %arg7: memref<1x64xf32, #tpu.memory_space<vmem>>, %arg8: memref<32x64xf32, #tpu.memory_space<vmem>>, %arg9: memref<1x64xf32, #tpu.memory_space<vmem>>, %arg10: memref<1x1x64xf32, #tpu.memory_space<vmem>>) attributes {dimension_semantics = [#tpu.dimension_semantics<parallel>], iteration_bounds = array<i64: 2>, scalar_prefetch = 0 : i64, scratch_operands = 0 : i64, tpu.core_type = #tpu.core_type<tc>, window_params = [{transform_indices = @transform_0, window_bounds = array<i64: 1, 256, 36>}, {pipeline_mode = #tpu.pipeline_mode<synchronous>, transform_indices = @transform_1, window_bounds = array<i64: 36, 16>}, {pipeline_mode = #tpu.pipeline_mode<synchronous>, transform_indices = @transform_2, window_bounds = array<i64: 1, 16>}, {pipeline_mode = #tpu.pipeline_mode<synchronous>, transform_indices = @transform_3, window_bounds = array<i64: 64, 144>}, {pipeline_mode = #tpu.pipeline_mode<synchronous>, transform_indices = @transform_4, window_bounds = array<i64: 144, 32>}, {pipeline_mode = #tpu.pipeline_mode<synchronous>, transform_indices = @transform_5, window_bounds = array<i64: 1, 32>}, {pipeline_mode = #tpu.pipeline_mode<synchronous>, transform_indices = @transform_6, window_bounds = array<i64: 1, 64>}, {pipeline_mode = #tpu.pipeline_mode<synchronous>, transform_indices = @transform_7, window_bounds = array<i64: 32, 64>}, {pipeline_mode = #tpu.pipeline_mode<synchronous>, transform_indices = @transform_8, window_bounds = array<i64: 1, 64>}, {transform_indices = @transform_9, window_bounds = array<i64: 1, 1, 64>}]} {
    %c0 = arith.constant 0 : index
    %c0_0 = arith.constant 0 : index
    %c0_1 = arith.constant 0 : index
    %0 = vector.load %arg1[%c0, %c0_0, %c0_1] : memref<1x256x36xbf16, #tpu.memory_space<vmem>>, vector<1x256x36xbf16>
    %1 = vector.shape_cast %0 : vector<1x256x36xbf16> to vector<256x36xbf16>
    %c0_2 = arith.constant 0 : index
    %c0_3 = arith.constant 0 : index
    %2 = vector.load %arg2[%c0_2, %c0_3] : memref<36x16xbf16, #tpu.memory_space<vmem>>, vector<36x16xbf16>
    %cst = arith.constant dense<0.000000e+00> : vector<256x16xf32>
    %3 = tpu.matmul %1, %2, %cst {dimension_numbers = #tpu.dot_dimension_numbers<[1], [0], [0], [1], [0, 0, 1, 1], [], []>} : vector<256x36xbf16>, vector<36x16xbf16>, vector<256x16xf32> -> vector<256x16xf32>
    %c0_4 = arith.constant 0 : index
    %c0_5 = arith.constant 0 : index
    %4 = vector.load %arg3[%c0_4, %c0_5] : memref<1x16xf32, #tpu.memory_space<vmem>>, vector<1x16xf32>
    %5 = vector.broadcast %4 : vector<1x16xf32> to vector<256x16xf32>
    %6 = arith.addf %3, %5 : vector<256x16xf32>
    %cst_6 = arith.constant 0.000000e+00 : f32
    %7 = vector.broadcast %cst_6 : f32 to vector<256x16xf32>
    %8 = arith.maximumf %6, %7 : vector<256x16xf32>
    %9 = vector.extract_strided_slice %8 {offsets = [0, 0], sizes = [64, 16], strides = [1, 1]} : vector<256x16xf32> to vector<64x16xf32>
    %10 = vector.extract_strided_slice %8 {offsets = [64, 0], sizes = [64, 16], strides = [1, 1]} : vector<256x16xf32> to vector<64x16xf32>
    %11 = arith.addf %9, %10 : vector<64x16xf32>
    %12 = vector.extract_strided_slice %8 {offsets = [128, 0], sizes = [64, 16], strides = [1, 1]} : vector<256x16xf32> to vector<64x16xf32>
    %13 = arith.addf %11, %12 : vector<64x16xf32>
    %14 = vector.extract_strided_slice %8 {offsets = [192, 0], sizes = [64, 16], strides = [1, 1]} : vector<256x16xf32> to vector<64x16xf32>
    %15 = arith.addf %13, %14 : vector<64x16xf32>
    %cst_7 = arith.constant 2.500000e-01 : f32
    %16 = vector.broadcast %cst_7 : f32 to vector<64x16xf32>
    %17 = arith.mulf %16, %15 : vector<64x16xf32>
    %c9_i32 = arith.constant 9 : i32
    %18 = tpu.dynamic_rotate %17 by %c9_i32 dim 0 : vector<64x16xf32>, i32 -> vector<64x16xf32>
    %c8_i32 = arith.constant 8 : i32
    %19 = tpu.dynamic_rotate %17 by %c8_i32 dim 0 : vector<64x16xf32>, i32 -> vector<64x16xf32>
    %c7_i32 = arith.constant 7 : i32
    %20 = tpu.dynamic_rotate %17 by %c7_i32 dim 0 : vector<64x16xf32>, i32 -> vector<64x16xf32>
    %c1_i32 = arith.constant 1 : i32
    %21 = tpu.dynamic_rotate %17 by %c1_i32 dim 0 : vector<64x16xf32>, i32 -> vector<64x16xf32>
    %c63_i32 = arith.constant 63 : i32
    %22 = tpu.dynamic_rotate %17 by %c63_i32 dim 0 : vector<64x16xf32>, i32 -> vector<64x16xf32>
    %c57_i32 = arith.constant 57 : i32
    %23 = tpu.dynamic_rotate %17 by %c57_i32 dim 0 : vector<64x16xf32>, i32 -> vector<64x16xf32>
    %c56_i32 = arith.constant 56 : i32
    %24 = tpu.dynamic_rotate %17 by %c56_i32 dim 0 : vector<64x16xf32>, i32 -> vector<64x16xf32>
    %c55_i32 = arith.constant 55 : i32
    %25 = tpu.dynamic_rotate %17 by %c55_i32 dim 0 : vector<64x16xf32>, i32 -> vector<64x16xf32>
    %26 = tpu.concatenate %18, %19, %20, %21, %17, %22, %23, %24, %25 in 1 : vector<64x16xf32>, vector<64x16xf32>, vector<64x16xf32>, vector<64x16xf32>, vector<64x16xf32>, vector<64x16xf32>, vector<64x16xf32>, vector<64x16xf32>, vector<64x16xf32> -> vector<64x144xf32>
    %c0_8 = arith.constant 0 : index
    %c0_9 = arith.constant 0 : index
    %27 = vector.load %arg4[%c0_8, %c0_9] : memref<64x144xf32, #tpu.memory_space<vmem>>, vector<64x144xf32>
    %28 = arith.mulf %26, %27 : vector<64x144xf32>
    %29 = arith.truncf %28 : vector<64x144xf32> to vector<64x144xbf16>
    %c0_10 = arith.constant 0 : index
    %c0_11 = arith.constant 0 : index
    %30 = vector.load %arg5[%c0_10, %c0_11] : memref<144x32xbf16, #tpu.memory_space<vmem>>, vector<144x32xbf16>
    %cst_12 = arith.constant dense<0.000000e+00> : vector<64x32xf32>
    %31 = tpu.matmul %29, %30, %cst_12 {dimension_numbers = #tpu.dot_dimension_numbers<[1], [0], [0], [1], [0, 0, 1, 1], [], []>} : vector<64x144xbf16>, vector<144x32xbf16>, vector<64x32xf32> -> vector<64x32xf32>
    %c0_13 = arith.constant 0 : index
    %c0_14 = arith.constant 0 : index
    %32 = vector.load %arg6[%c0_13, %c0_14] : memref<1x32xf32, #tpu.memory_space<vmem>>, vector<1x32xf32>
    %33 = vector.broadcast %32 : vector<1x32xf32> to vector<64x32xf32>
    %34 = arith.addf %31, %33 : vector<64x32xf32>
    %cst_15 = arith.constant 0.000000e+00 : f32
    %35 = vector.broadcast %cst_15 : f32 to vector<64x32xf32>
    %36 = arith.maximumf %34, %35 : vector<64x32xf32>
    %c0_16 = arith.constant 0 : index
    %c0_17 = arith.constant 0 : index
    %37 = vector.load %arg7[%c0_16, %c0_17] : memref<1x64xf32, #tpu.memory_space<vmem>>, vector<1x64xf32>
    %cst_18 = arith.constant dense<0.000000e+00> : vector<1x32xf32>
    %38 = tpu.matmul %37, %36, %cst_18 {dimension_numbers = #tpu.dot_dimension_numbers<[1], [0], [0], [1], [0, 0, 1, 1], [], []>} : vector<1x64xf32>, vector<64x32xf32>, vector<1x32xf32> -> vector<1x32xf32>
    %c0_19 = arith.constant 0 : index
    %c0_20 = arith.constant 0 : index
    %39 = vector.load %arg8[%c0_19, %c0_20] : memref<32x64xf32, #tpu.memory_space<vmem>>, vector<32x64xf32>
    %cst_21 = arith.constant dense<0.000000e+00> : vector<1x64xf32>
    %40 = tpu.matmul %38, %39, %cst_21 {dimension_numbers = #tpu.dot_dimension_numbers<[1], [0], [0], [1], [0, 0, 1, 1], [], []>} : vector<1x32xf32>, vector<32x64xf32>, vector<1x64xf32> -> vector<1x64xf32>
    %c0_22 = arith.constant 0 : index
    %c0_23 = arith.constant 0 : index
    %41 = vector.load %arg9[%c0_22, %c0_23] : memref<1x64xf32, #tpu.memory_space<vmem>>, vector<1x64xf32>
    %42 = arith.addf %40, %41 : vector<1x64xf32>
    %c0_24 = arith.constant 0 : index
    %c0_25 = arith.constant 0 : index
    %c0_26 = arith.constant 0 : index
    %43 = vector.load %arg10[%c0_24, %c0_25, %c0_26] : memref<1x1x64xf32, #tpu.memory_space<vmem>>, vector<1x1x64xf32>
    %44 = vector.shape_cast %43 : vector<1x1x64xf32> to vector<1x64xf32>
    %45 = vector.shape_cast %42 : vector<1x64xf32> to vector<1x1x64xf32>
    tpu.vector_store %arg10[%c0_24, %c0_25, %c0_26], %45 {strides = array<i32>} : memref<1x1x64xf32, #tpu.memory_space<vmem>>, vector<1x1x64xf32>,
    return
  }
  func.func @transform_0(%arg0: i32) -> (i32, i32, i32) {
    %c0_i32 = arith.constant 0 : i32
    %c0_i32_0 = arith.constant 0 : i32
    %c0_i32_1 = arith.constant 0 : i32
    return %arg0, %c0_i32, %c0_i32_0 : i32, i32, i32
  }
  func.func @transform_1(%arg0: i32) -> (i32, i32) {
    %c0_i32 = arith.constant 0 : i32
    %c0_i32_0 = arith.constant 0 : i32
    %c0_i32_1 = arith.constant 0 : i32
    return %c0_i32, %c0_i32_0 : i32, i32
  }
  func.func @transform_2(%arg0: i32) -> (i32, i32) {
    %c0_i32 = arith.constant 0 : i32
    %c0_i32_0 = arith.constant 0 : i32
    %c0_i32_1 = arith.constant 0 : i32
    return %c0_i32, %c0_i32_0 : i32, i32
  }
  func.func @transform_3(%arg0: i32) -> (i32, i32) {
    %c0_i32 = arith.constant 0 : i32
    %c0_i32_0 = arith.constant 0 : i32
    %c0_i32_1 = arith.constant 0 : i32
    return %c0_i32, %c0_i32_0 : i32, i32
  }
  func.func @transform_4(%arg0: i32) -> (i32, i32) {
    %c0_i32 = arith.constant 0 : i32
    %c0_i32_0 = arith.constant 0 : i32
    %c0_i32_1 = arith.constant 0 : i32
    return %c0_i32, %c0_i32_0 : i32, i32
  }
  func.func @transform_5(%arg0: i32) -> (i32, i32) {
    %c0_i32 = arith.constant 0 : i32
    %c0_i32_0 = arith.constant 0 : i32
    %c0_i32_1 = arith.constant 0 : i32
    return %c0_i32, %c0_i32_0 : i32, i32
  }
  func.func @transform_6(%arg0: i32) -> (i32, i32) {
    %c0_i32 = arith.constant 0 : i32
    %c0_i32_0 = arith.constant 0 : i32
    %c0_i32_1 = arith.constant 0 : i32
    return %c0_i32, %c0_i32_0 : i32, i32
  }
  func.func @transform_7(%arg0: i32) -> (i32, i32) {
    %c0_i32 = arith.constant 0 : i32
    %c0_i32_0 = arith.constant 0 : i32
    %c0_i32_1 = arith.constant 0 : i32
    return %c0_i32, %c0_i32_0 : i32, i32
  }
  func.func @transform_8(%arg0: i32) -> (i32, i32) {
    %c0_i32 = arith.constant 0 : i32
    %c0_i32_0 = arith.constant 0 : i32
    %c0_i32_1 = arith.constant 0 : i32
    return %c0_i32, %c0_i32_0 : i32, i32
  }
  func.func @transform_9(%arg0: i32) -> (i32, i32, i32) {
    %c0_i32 = arith.constant 0 : i32
    %c0_i32_0 = arith.constant 0 : i32
    %c0_i32_1 = arith.constant 0 : i32
    return %arg0, %c0_i32, %c0_i32_0 : i32, i32, i32
  }
}

</mosaic_0001>

<bundles_post_ra>
// kernel: foster_forward.1
= control target key start
LH: loop header
LB: loop body
LE: loop exit
PB: predicated region body
PF: predicated region fallthrough
CT: control target
= control target key end

     0   :  { %s1741_s30 = smov 0   ;;  %s2240_s0 = inlined_call_operand.vmem [shape: bf16[2,256,36], index: 0, kind: input, shape index: {}]   ;;  %s2241_s1 = inlined_call_operand.vmem [shape: bf16[36,16], index: 1, kind: input, shape index: {}]   ;;  %s2242_s2 = inlined_call_operand.vmem [shape: f32[1,16], index: 2, kind: input, shape index: {}]   ;;  %s2243_s3 = inlined_call_operand.vmem [shape: f32[64,144], index: 3, kind: input, shape index: {}]   ;;  %s2244_s4 = inlined_call_operand.vmem [shape: bf16[144,32], index: 4, kind: input, shape index: {}]   ;;  %s2245_s5 = inlined_call_operand.vmem [shape: f32[1,32], index: 5, kind: input, shape index: {}]   ;;  %s2246_s6 = inlined_call_operand.vmem [shape: f32[1,64], index: 6, kind: input, shape index: {}]   ;;  %s2247_s7 = inlined_call_operand.vmem [shape: f32[32,64], index: 7, kind: input, shape index: {}]   ;;  %s2248_s8 = inlined_call_operand.vmem [shape: f32[1,64], index: 8, kind: input, shape index: {}]   ;;  %s2249_s9 = inlined_call_operand.vmem [shape: f32[2,1,64], index: 9, kind: output, shape index: {}]  }
   0x1 LB: > { %s1443_s10 = sadd.s32 4294967295, %s1678_s30   ;;  %p1447_p0 = scmp.ge.s32.totalorder %s1678_s30, 1  ;;  %s1678_s30 = sphi %s1741_s30, %s19_s30  }
   0x2   : > { %p287_p1 = scmp.lt.s32.totalorder %s1678_s30, 3 }
   0x4   : > { %p288_p2 = pnand %p1447_p0, %p287_p1 }
   0x5   : > { %v1644_v0 = vld [vmem:[%s2241_s1] sm:$0xff] (!%p288_p2)   ;;  %v1645_v1 = vld [vmem:[%s2241_s1 + $0x8] sm:$0xff] (!%p288_p2)   ;;  %p321_p3 = scmp.lt.s32.totalorder (!%p288_p2), %s1443_s10, 1  ;;  %v1646_v2 = vld [vmem:[%s2241_s1 + $0x10] ss:$0 sps:$4 sm:$0x33] (!%p288_p2)  }
   0x6   : > { %291 = sbr.rel (%p288_p2) target bundleno = 1164 (0x48c), region = 56  ;;  %1538 = vmatprep.subr.bf16.mxu0 (!%p288_p2), %v1644_v0  ;;  %vm518_vm0 = vcmask (!%p288_p2), 1041408   ;;  %vm469_vm1 = vcmask (!%p288_p2), 293888   ;;  %v1801_v28 = vld [vmem:[%s2242_s2] ss:$0 sm:$0xff] (!%p288_p2)  ;;  %s1680_s23 = smov (!%p288_p2), 64  }
   0x7   : > { %1539 = vmatpush3.bf16.msra.mxu0 (!%p288_p2), %v1644_v0  ;;  %v520_v4 = vsel (!%p288_p2), %vm518_vm0, %v1646_v2, 0  ;;  %s1681_s24 = smov (!%p288_p2), 112   ;;  %s1682_s29 = smov (!%p288_p2), 16   ;;  %vm975_vm4 = vcmask (!%p288_p2), 130048   ;;  %vm984_vm5 = vcmask (!%p288_p2), 261120   ;;  %vm993_vm6 = vcmask (!%p288_p2), 392192  }
   0x8   : > { %1540 = vmatprep.subr.bf16.mxu0 (!%p288_p2), %v1645_v1  ;;  %s1683_s11 = smov (!%p288_p2), 32   ;;  %s1684_s12 = smov (!%p288_p2), 48   ;;  %vm1002_vm7 = vcmask (!%p288_p2), 523264   ;;  %vm1011_vm8 = vcmask (!%p288_p2), 654336   ;;  %vm1020_vm9 = vcmask (!%p288_p2), 785408   ;;  %vm1029_vm10 = vcmask (!%p288_p2), 916480  }
   0x9   : > { %s1685_s13 = smov (!%p288_p2), 80   ;;  %s1686_s14 = smov (!%p288_p2), 96   ;;  %vm1689_vm11 = vmmov (!%p288_p2), 0   ;;  %vm1394_vm12 = vcmask (!%p288_p2), 516096  }
   0xb   : > { %1541 = vmatpush3.bf16.msra.mxu0 (!%p288_p2), %v1645_v1 }
   0xc   : > { %1624 = vmatprep.subr.msk.bf16.mxu0 (!%p288_p2), %vm518_vm0, %v1646_v2 }
   0xd   : > { %s2251_s10 = smov (!%p321_p3, %s1443_s10), 1 }
   0xe   : > { %s1504_s17 = sshll.u32 %s2251_s10, 7 }
   0xf   : > { %s1764_s20 = scalar_lea.vmem %s2240_s0, %s1504_s17  ;;  %1543 = vmatpush3.bf16.msra.mxu0 %v520_v4 }
  0x10   : > { %v1647_v3 = vld [vmem:[%s1764_s20] sm:$0xff]   ;;  %v1648_v5 = vld [vmem:[%s1764_s20 + $0x8] sm:$0xff]   ;;  %v1649_v6 = vld [vmem:[%s1764_s20 + $0x10] sm:$0xff]  }
  0x11   : > { %1544 = vmatprep.mubr.msk.bf16.mxu0 %vm469_vm1, %v1647_v3  ;;  %v1650_v7 = vld [vmem:[%s1764_s20 + $0x18] sm:$0xff]   ;;  %v1651_v8 = vld [vmem:[%s1764_s20 + $0x20] sm:$0xff]   ;;  %v1652_v9 = vld [vmem:[%s1764_s20 + $0x28] sm:$0xff]  }
  0x12   : > { %1545 = vmatmul.mubr.msk.bf16.vlgmr.msra.gmra.mrb[0].mxu0 %vm469_vm1, %v1648_v5  ;;  %v1653_v10 = vld [vmem:[%s1764_s20 + $0x30] sm:$0xff]   ;;  %v1654_v11 = vld [vmem:[%s1764_s20 + $0x38] sm:$0xff]   ;;  %v1655_v12 = vld [vmem:[%s1764_s20 + $0x40] sm:$0xff]  }
  0x13   : > { %1548 = vmatprep.mubr.msk.bf16.mxu0 %vm469_vm1, %v1649_v6  ;;  %v1656_v13 = vld [vmem:[%s1764_s20 + $0x48] sm:$0xff]   ;;  %v1657_v14 = vld [vmem:[%s1764_s20 + $0x50] sm:$0xff]   ;;  %v1658_v15 = vld [vmem:[%s1764_s20 + $0x58] sm:$0xff]  }
  0x14   : > { %v1659_v16 = vld [vmem:[%s1764_s20 + $0x60] sm:$0xff]   ;;  %v1660_v17 = vld [vmem:[%s1764_s20 + $0x68] sm:$0xff]   ;;  %v1661_v18 = vld [vmem:[%s1764_s20 + $0x70] sm:$0xff]  }
  0x15   : > { %v1662_v19 = vld [vmem:[%s1764_s20 + $0x78] sm:$0xff]   ;;  %s328_s20 = scalar_lea.vmem %s2249_s9, %s2251_s10 }
  0x1a   : > { %1549 = vmatmul.mubr.msk.bf16.gmra.mrb[4].mxu0 %vm469_vm1, %v1650_v7 }
  0x1b   : > { %1552 = vmatprep.mubr.msk.bf16.mxu0 %vm469_vm1, %v1651_v8 }
  0x22   : > { %1553 = vmatmul.mubr.msk.bf16.gmra.mrb[8].mxu0 %vm469_vm1, %v1652_v9 }
  0x23   : > { %1556 = vmatprep.mubr.msk.bf16.mxu0 %vm469_vm1, %v1653_v10 }
  0x2a   : > { %1557 = vmatmul.mubr.msk.bf16.gmra.mrb[12].mxu0 %vm469_vm1, %v1654_v11 }
  0x2b   : > { %1560 = vmatprep.mubr.msk.bf16.mxu0 %vm469_vm1, %v1655_v12 }
  0x32   : > { %1561 = vmatmul.mubr.msk.bf16.gmra.mrb[16].mxu0 %vm469_vm1, %v1656_v13 }
  0x33   : > { %1564 = vmatprep.mubr.msk.bf16.mxu0 %vm469_vm1, %v1657_v14 }
  0x3a   : > { %1565 = vmatmul.mubr.msk.bf16.gmra.mrb[20].mxu0 %vm469_vm1, %v1658_v15 }
  0x3b   : > { %1568 = vmatprep.mubr.msk.bf16.mxu0 %vm469_vm1, %v1659_v16 }
  0x42   : > { %1569 = vmatmul.mubr.msk.bf16.gmra.mrb[24].mxu0 %vm469_vm1, %v1660_v17 }
  0x43   : > { %1572 = vmatprep.mubr.msk.bf16.mxu0 %vm469_vm1, %v1661_v18 }
  0x4a   : > { %1573 = vmatmul.mubr.msk.bf16.gmra.mrb[28].mxu0 %vm469_vm1, %v1662_v19 }
  0xe5   : > { %v1546_v20 = vpop.f32.mrb[0].mxu0 }
  0xe6   : > { %v556_v21 = vpop.f32.mrb[1].mxu0  ;;  %v565_v29 = vadd.f32 %v1546_v20, %v1801_v28 }
  0xe7   : > { %v1547_v22 = vpop.f32.mrb[2].mxu0  ;;  %v557_v30 = vadd.f32 %v1801_v28, %v556_v21 }
  0xe8   : > { %v559_v23 = vpop.f32.mrb[3].mxu0  ;;  %v568_v32 = vadd.f32 %v1547_v22, %v1801_v28  ;;  %v685_v38 = vmax.f32 %v565_v29, 0.0 }
  0xe9   : > { %v560_v35 = vadd.f32 %v1801_v28, %v559_v23  ;;  %v683_v42 = vmax.f32 %v557_v30, 0.0 }
  0xea   : > { %v686_v45 = vmax.f32 %v568_v32, 0.0 }
  0xeb   : > { %v684_v48 = vmax.f32 %v560_v35, 0.0 }
  0xed   : > { %v1550_v24 = vpop.f32.mrb[4].mxu0 }
  0xee   : > { %v572_v25 = vpop.f32.mrb[5].mxu0  ;;  %v581_v51 = vadd.f32 %v1550_v24, %v1801_v28 }
  0xef   : > { %v1551_v26 = vpop.f32.mrb[6].mxu0  ;;  %v573_v53 = vadd.f32 %v1801_v28, %v572_v25 }
  0xf0   : > { %v575_v27 = vpop.f32.mrb[7].mxu0  ;;  %v584_v56 = vadd.f32 %v1551_v26, %v1801_v28  ;;  %v689_v62 = vmax.f32 %v581_v51, 0.0 }
  0xf1   : > { %v576_v59 = vadd.f32 %v1801_v28, %v575_v27  ;;  %v687_v2 = vmax.f32 %v573_v53, 0.0 }
  0xf2   : > { %v690_v5 = vmax.f32 %v584_v56, 0.0 }
  0xf3   : > { %v688_v8 = vmax.f32 %v576_v59, 0.0 }
  0xf5   : > { %v1554_v31 = vpop.f32.mrb[8].mxu0 }
  0xf6   : > { %v597_v33 = vadd.f32 %v1554_v31, %v1801_v28  ;;  %v588_v34 = vpop.f32.mrb[9].mxu0 }
  0xf7   : > { %v589_v36 = vadd.f32 %v1801_v28, %v588_v34  ;;  %v1555_v37 = vpop.f32.mrb[10].mxu0 }
  0xf8   : > { %v693_v39 = vmax.f32 %v597_v33, 0.0  ;;  %v600_v40 = vadd.f32 %v1555_v37, %v1801_v28  ;;  %v591_v41 = vpop.f32.mrb[11].mxu0 }
  0xf9   : > { %v691_v43 = vmax.f32 %v589_v36, 0.0  ;;  %v592_v44 = vadd.f32 %v1801_v28, %v591_v41 }
  0xfa   : > { %v717_v46 = vadd.f32 %v693_v39, %v685_v38  ;;  %v694_v47 = vmax.f32 %v600_v40, 0.0 }
  0xfb   : > { %v715_v49 = vadd.f32 %v691_v43, %v683_v42  ;;  %v692_v50 = vmax.f32 %v592_v44, 0.0 }
  0xfc   : > { %v718_v52 = vadd.f32 %v694_v47, %v686_v45  ;;  %v755_v47 = vlaneseq }
  0xfd   : > { %v716_v54 = vadd.f32 %v692_v50, %v684_v48  ;;  %v1558_v55 = vpop.f32.mrb[12].mxu0 }
  0xfe   : > { %v613_v57 = vadd.f32 %v1558_v55, %v1801_v28  ;;  %v604_v58 = vpop.f32.mrb[13].mxu0 }
  0xff   : > { %v605_v60 = vadd.f32 %v1801_v28, %v604_v58  ;;  %v1559_v61 = vpop.f32.mrb[14].mxu0 }
 0x100   : > { %v697_v63 = vmax.f32 %v613_v57, 0.0  ;;  %v616_v0 = vadd.f32 %v1559_v61, %v1801_v28  ;;  %v607_v1 = vpop.f32.mrb[15].mxu0  ;;  %v1831_v57 = vshrl.u32 %v755_v47, 7 }
 0x101   : > { %v695_v3 = vmax.f32 %v605_v60, 0.0  ;;  %v608_v4 = vadd.f32 %v1801_v28, %v607_v1 }
 0x102   : > { %v721_v6 = vadd.f32 %v697_v63, %v689_v62  ;;  %v698_v7 = vmax.f32 %v616_v0, 0.0  ;;  %vm774_vm2 = vcmp.lt.s32.totalorder %v1831_v57, 7  ;;  %vm757_vm3 = vcmp.lt.s32.totalorder %v1831_v57, 1 }
 0x103   : > { %v719_v9 = vadd.f32 %v695_v3, %v687_v2  ;;  %v696_v10 = vmax.f32 %v608_v4, 0.0 }
 0x104   : > { %v722_v11 = vadd.f32 %v698_v7, %v690_v5 }
 0x105   : > { %v720_v12 = vadd.f32 %v696_v10, %v688_v8  ;;  %v1562_v13 = vpop.f32.mrb[16].mxu0 }
 0x106   : > { %v629_v14 = vadd.f32 %v1562_v13, %v1801_v28  ;;  %v620_v15 = vpop.f32.mrb[17].mxu0 }
 0x107   : > { %v621_v16 = vadd.f32 %v1801_v28, %v620_v15  ;;  %v1563_v17 = vpop.f32.mrb[18].mxu0  ;;  %v1041_v15 = vld [vmem:[%s2243_s3 + $0x18] sm:$0xff] }
 0x108   : > { %v701_v18 = vmax.f32 %v629_v14, 0.0  ;;  %v632_v19 = vadd.f32 %v1563_v17, %v1801_v28  ;;  %v623_v20 = vpop.f32.mrb[19].mxu0 }
 0x109   : > { %v699_v21 = vmax.f32 %v621_v16, 0.0  ;;  %v624_v22 = vadd.f32 %v1801_v28, %v623_v20  ;;  %v1039_v20 = vld [vmem:[%s2243_s3 + $0x8] sm:$0xff] }
 0x10a   : > { %v725_v23 = vadd.f32 %v717_v46, %v701_v18  ;;  %v702_v24 = vmax.f32 %v632_v19, 0.0 }
 0x10b   : > { %v723_v25 = vadd.f32 %v715_v49, %v699_v21  ;;  %v700_v26 = vmax.f32 %v624_v22, 0.0 }
 0x10c   : > { %v726_v27 = vadd.f32 %v718_v52, %v702_v24 }
 0x10d   : > { %v724_v29 = vadd.f32 %v716_v54, %v700_v26  ;;  %v1566_v30 = vpop.f32.mrb[20].mxu0 }
 0x10e   : > { %v645_v31 = vadd.f32 %v1566_v30, %v1801_v28  ;;  %v636_v32 = vpop.f32.mrb[21].mxu0 }
 0x10f   : > { %v637_v33 = vadd.f32 %v1801_v28, %v636_v32  ;;  %v1567_v34 = vpop.f32.mrb[22].mxu0 }
 0x110   : > { %v705_v35 = vmax.f32 %v645_v31, 0.0  ;;  %v648_v36 = vadd.f32 %v1567_v34, %v1801_v28  ;;  %v639_v37 = vpop.f32.mrb[23].mxu0 }
 0x111   : > { %v703_v38 = vmax.f32 %v637_v33, 0.0  ;;  %v640_v39 = vadd.f32 %v1801_v28, %v639_v37 }
 0x112   : > { %v729_v40 = vadd.f32 %v721_v6, %v705_v35  ;;  %v706_v41 = vmax.f32 %v648_v36, 0.0 }
 0x113   : > { %v727_v42 = vadd.f32 %v719_v9, %v703_v38  ;;  %v704_v43 = vmax.f32 %v640_v39, 0.0 }
 0x114   : > { %v730_v44 = vadd.f32 %v722_v11, %v706_v41 }
 0x115   : > { %v728_v45 = vadd.f32 %v720_v12, %v704_v43  ;;  %v1570_v46 = vpop.f32.mrb[24].mxu0 }
 0x116   : > { %v661_v48 = vadd.f32 %v1570_v46, %v1801_v28  ;;  %v652_v49 = vpop.f32.mrb[25].mxu0 }
 0x117   : > { %v653_v50 = vadd.f32 %v1801_v28, %v652_v49  ;;  %v1571_v51 = vpop.f32.mrb[26].mxu0 }
 0x118   : > { %v709_v52 = vmax.f32 %v661_v48, 0.0  ;;  %v664_v53 = vadd.f32 %v1571_v51, %v1801_v28  ;;  %v655_v54 = vpop.f32.mrb[27].mxu0 }
 0x119   : > { %v707_v55 = vmax.f32 %v653_v50, 0.0  ;;  %v656_v56 = vadd.f32 %v1801_v28, %v655_v54 }
 0x11a   : > { %v733_v58 = vadd.f32 %v725_v23, %v709_v52  ;;  %v710_v59 = vmax.f32 %v664_v53, 0.0 }
 0x11b   : > { %v731_v60 = vadd.f32 %v723_v25, %v707_v55  ;;  %v708_v61 = vmax.f32 %v656_v56, 0.0 }
 0x11c   : > { %v741_v62 = vmul.f32 0.25, %v733_v58  ;;  %v734_v63 = vadd.f32 %v726_v27, %v710_v59 }
 0x11d   : > { %v732_v0 = vadd.f32 %v724_v29, %v708_v61  ;;  %v1574_v1 = vpop.f32.mrb[28].mxu0  ;;  %v1834_v2 = vmul.f32 0.25, %v731_v60  ;;  %v1663_v61 = vld [vmem:[%s2244_s4] sm:$0xff]  }
 0x11e   : > { %v1836_v3 = vmul.f32 0.25, %v734_v63  ;;  %v677_v4 = vadd.f32 %v1574_v1, %v1801_v28  ;;  %883 = vrot.lane.b32.xlu0 %v741_v62, %s1680_s23  ;;  %953 = vrot.lane.b32.xlu1 %v741_v62, %s1681_s24  ;;  %v668_v5 = vpop.f32.mrb[29].mxu0  ;;  %v768_v9 = vrot.slane %v741_v62, 1  ;;  %v749_v10 = vrot.slane %v741_v62, 7  ;;  %v1664_v63 = vld [vmem:[%s2244_s4 + $0x8] sm:$0xff]   ;;  %v1666_v1 = vld [vmem:[%s2244_s4 + $0x18] sm:$0xff]  }
 0x11f   : > { %v1842_v6 = vmul.f32 0.25, %v732_v0  ;;  %v669_v7 = vadd.f32 %v1801_v28, %v668_v5  ;;  %v1575_v8 = vpop.f32.mrb[30].mxu0  ;;  %v766_v39 = vrot.slane %v1834_v2, 1  ;;  %v747_v59 = vrot.slane %v1834_v2, 7  ;;  %v1665_v0 = vld [vmem:[%s2244_s4 + $0x10] sm:$0xff]  }
 0x120   : > { %v713_v11 = vmax.f32 %v677_v4, 0.0  ;;  %v680_v12 = vadd.f32 %v1575_v8, %v1801_v28  ;;  %v671_v13 = vpop.f32.mrb[31].mxu0  ;;  %v769_v14 = vrot.slane %v1836_v3, 1  ;;  %v750_v16 = vrot.slane %v1836_v3, 7  ;;  %v1668_v4 = vld [vmem:[%s2244_s4 + $0x28] sm:$0xff]   ;;  %v1669_v5 = vld [vmem:[%s2244_s4 + $0x30] sm:$0xff]  }
 0x121   : > { %v711_v17 = vmax.f32 %v669_v7, 0.0  ;;  %v672_v18 = vadd.f32 %v1801_v28, %v671_v13  ;;  %v767_v19 = vrot.slane %v1842_v6, 1  ;;  %v748_v21 = vrot.slane %v1842_v6, 7  ;;  %v1671_v7 = vld [vmem:[%s2244_s4 + $0x40] sm:$0xff]  }
 0x122   : > { %v737_v22 = vadd.f32 %v729_v40, %v713_v11  ;;  %v714_v23 = vmax.f32 %v680_v12, 0.0  ;;  %797 = vrot.lane.b32.xlu1 %v741_v62, %s1682_s29  ;;  %793 = vrot.lane.b32.xlu0 %v1834_v2, %s1682_s29  ;;  %v779_v24 = vsel %vm774_vm2, %v768_v9, %v769_v14  ;;  %v1864_v28 = vsel %vm757_vm3, %v749_v10, %v750_v16 }
 0x123   : > { %v735_v25 = vadd.f32 %v727_v42, %v711_v17  ;;  %v712_v26 = vmax.f32 %v672_v18, 0.0  ;;  %v780_v27 = vsel %vm774_vm2, %v767_v19, %v768_v9  ;;  %v1057_v29 = vmul.f32 %v1041_v15, %v779_v24 }
 0x124   : > { %v1868_v30 = vmul.f32 0.25, %v737_v22  ;;  %v738_v31 = vadd.f32 %v730_v44, %v714_v23  ;;  %v1055_v32 = vmul.f32 %v1039_v20, %v780_v27  ;;  %v1880_v37 = vsel %vm757_vm3, %v748_v21, %v749_v10 }
 0x125   : > { %v1870_v33 = vmul.f32 0.25, %v735_v25  ;;  %v736_v34 = vadd.f32 %v728_v45, %v712_v26  ;;  %v1945_v58 = vsel %vm774_vm2, %v766_v39, %v767_v19  ;;  %v1954_v60 = vsel %vm757_vm3, %v747_v59, %v748_v21 }
 0x126   : > { %v1872_v35 = vmul.f32 0.25, %v738_v31  ;;  %885 = vrot.lane.b32.xlu1 %v1836_v3, %s1680_s23  ;;  %879 = vrot.lane.b32.xlu0 %v1834_v2, %s1680_s23  ;;  %v1071_v36 = vpack.c.bf16 %v1057_v29, %v1055_v32  ;;  %v772_v43 = vrot.slane %v1868_v30, 1  ;;  %v753_v45 = vrot.slane %v1868_v30, 7 }
 0x127   : > { %v1882_v38 = vmul.f32 0.25, %v736_v34  ;;  %v770_v40 = vrot.slane %v1870_v33, 1  ;;  %v751_v41 = vrot.slane %v1870_v33, 7  ;;  %v1687_v62 = vmov 0  }
 0x128   : > { %1496 = vmatprep.mubr.msk.bf16.mxu1 %vm975_vm4, %v1071_v36  ;;  %v773_v42 = vrot.slane %v1872_v35, 1  ;;  %v754_v44 = vrot.slane %v1872_v35, 7  ;;  %1169 = vmatprep.subr.bf16.mxu1 %v1687_v62 }
 0x129   : > { %v1894_v46 = vsel %vm774_vm2, %v769_v14, %v770_v40  ;;  %v1898_v47 = vsel %vm757_vm3, %v750_v16, %v751_v41  ;;  %v771_v48 = vrot.slane %v1882_v38, 1  ;;  %v752_v49 = vrot.slane %v1882_v38, 7  ;;  %1170 = vmatpush1.bf16.msra.mxu1 %v1663_v61 }
 0x12a   : > { %881 = vrot.lane.b32.xlu1 %v1842_v6, %s1680_s23  ;;  %955 = vrot.lane.b32.xlu0 %v1836_v3, %s1681_s24  ;;  %v1908_v50 = vsel %vm774_vm2, %v773_v42, %v766_v39  ;;  %v1912_v51 = vsel %vm774_vm2, %v772_v43, %v773_v42  ;;  %v1918_v52 = vsel %vm757_vm3, %v753_v45, %v754_v44 }
 0x12b   : > { %v1922_v53 = vsel %vm774_vm2, %v770_v40, %v771_v48  ;;  %v1926_v54 = vsel %vm757_vm3, %v751_v41, %v752_v49  ;;  %v1930_v55 = vsel %vm774_vm2, %v771_v48, %v772_v43  ;;  %v1934_v56 = vsel %vm757_vm3, %v752_v49, %v753_v45  ;;  %1171 = vmatprep.subr.bf16.mxu1 %v1687_v62 }
 0x12c   : > { %v765_v8 = vsel %vm757_vm3, %v754_v44, %v747_v59 }
 0x12d   : > { %1172 = vmatpush1.bf16.msra.mxu1 %v1664_v63 }
 0x12e   : > { %829 = vrot.lane.b32.xlu1 %v779_v24, %s1683_s11  ;;  %799 = vrot.lane.b32.xlu0 %v1836_v3, %s1682_s29  ;;  %v1667_v3 = vld [vmem:[%s2244_s4 + $0x20] sm:$0xff]  }
 0x12f   : > { %1173 = vmatprep.subr.bf16.mxu1 %v1687_v62 }
 0x131   : > { %1174 = vmatpush1.bf16.msra.mxu1 %v1665_v0 }
 0x132   : > { %861 = vrot.lane.b32.xlu1 %v1864_v28, %s1684_s12  ;;  %951 = vrot.lane.b32.xlu0 %v1842_v6, %s1681_s24 }
 0x133   : > { %1175 = vmatprep.subr.bf16.mxu1 %v1687_v62 }
 0x135   : > { %1176 = vmatpush1.bf16.msra.mxu1 %v1666_v1 }
 0x136   : > { %795 = vrot.lane.b32.xlu0 %v1842_v6, %s1682_s29  ;;  %825 = vrot.lane.b32.xlu1 %v1945_v58, %s1683_s11  ;;  %v1670_v6 = vld [vmem:[%s2244_s4 + $0x38] sm:$0xff]  }
 0x137   : > { %1177 = vmatprep.subr.bf16.mxu1 %v1687_v62 }
 0x139   : > { %1178 = vmatpush1.bf16.msra.mxu1 %v1667_v3 }
 0x13a   : > { %907 = vrot.lane.b32.xlu0 %v779_v24, %s1685_s13  ;;  %857 = vrot.lane.b32.xlu1 %v1954_v60, %s1684_s12 }
 0x13b   : > { %1179 = vmatprep.subr.bf16.mxu1 %v1687_v62 }
 0x13d   : > { %1180 = vmatpush1.bf16.msra.mxu1 %v1668_v4 }
 0x13e   : > { %931 = vrot.lane.b32.xlu0 %v1864_v28, %s1686_s14  ;;  %905 = vrot.lane.b32.xlu1 %v780_v27, %s1685_s13 }
 0x13f   : > { %1181 = vmatprep.subr.bf16.mxu1 %v1687_v62 }
 0x141   : > { %1182 = vmatpush1.bf16.msra.mxu1 %v1669_v5 }
 0x142   : > { %903 = vrot.lane.b32.xlu0 %v1945_v58, %s1685_s13  ;;  %929 = vrot.lane.b32.xlu1 %v1880_v37, %s1686_s14 }
 0x143   : > { %1183 = vmatprep.subr.bf16.mxu1 %v1687_v62 }
 0x145   : > { %1184 = vmatpush1.bf16.msra.mxu1 %v1670_v6 }
 0x146   : > { %927 = vrot.lane.b32.xlu0 %v1954_v60, %s1686_s14  ;;  %961 = vrot.lane.b32.xlu1 %v1868_v30, %s1681_s24 }
 0x147   : > { %1185 = vmatprep.subr.bf16.mxu1 %v1687_v62 }
 0x149   : > { %1186 = vmatpush1.bf16.msra.mxu1 %v1671_v7 }
 0x14a   : > { %827 = vrot.lane.b32.xlu0 %v780_v27, %s1683_s11  ;;  %805 = vrot.lane.b32.xlu1 %v1868_v30, %s1682_s29 }
 0x14e   : > { %859 = vrot.lane.b32.xlu0 %v1880_v37, %s1684_s12  ;;  %957 = vrot.lane.b32.xlu1 %v1870_v33, %s1681_s24 }
 0x152   : > { %891 = vrot.lane.b32.xlu0 %v1868_v30, %s1680_s23  ;;  %801 = vrot.lane.b32.xlu1 %v1870_v33, %s1682_s29 }
 0x156   : > { %887 = vrot.lane.b32.xlu0 %v1870_v33, %s1680_s23  ;;  %893 = vrot.lane.b32.xlu1 %v1872_v35, %s1680_s23 }
 0x15a   : > { %791 = vrot.lane.b32.xlu0 %v1872_v35, %s1682_s29  ;;  %889 = vrot.lane.b32.xlu1 %v1882_v38, %s1680_s23 }
 0x15e   : > { %959 = vrot.lane.b32.xlu0 %v1882_v38, %s1681_s24  ;;  %909 = vrot.lane.b32.xlu1 %v1894_v46, %s1685_s13 }
 0x162   : > { %803 = vrot.lane.b32.xlu0 %v1882_v38, %s1682_s29  ;;  %933 = vrot.lane.b32.xlu1 %v1898_v47, %s1686_s14 }
 0x166   : > { %831 = vrot.lane.b32.xlu0 %v1894_v46, %s1683_s11  ;;  %823 = vrot.lane.b32.xlu1 %v1908_v50, %s1683_s11 }
 0x16a   : > { %863 = vrot.lane.b32.xlu0 %v1898_v47, %s1684_s12  ;;  %837 = vrot.lane.b32.xlu1 %v1912_v51, %s1683_s11 }
 0x16e   : > { %855 = vrot.lane.b32.xlu0 %v765_v8, %s1684_s12  ;;  %869 = vrot.lane.b32.xlu1 %v1918_v52, %s1684_s12 }
 0x172   : > { %915 = vrot.lane.b32.xlu0 %v1912_v51, %s1685_s13  ;;  %833 = vrot.lane.b32.xlu1 %v1922_v53, %s1683_s11 }
 0x176   : > { %911 = vrot.lane.b32.xlu0 %v1922_v53, %s1685_s13  ;;  %865 = vrot.lane.b32.xlu1 %v1926_v54, %s1684_s12 }
 0x17a   : > { %935 = vrot.lane.b32.xlu0 %v1926_v54, %s1686_s14  ;;  %913 = vrot.lane.b32.xlu1 %v1930_v55, %s1685_s13 }
 0x17e   : > { %939 = vrot.lane.b32.xlu0 %v1918_v52, %s1686_s14  ;;  %937 = vrot.lane.b32.xlu1 %v1934_v56, %s1686_s14 }
 0x182   : > { %835 = vrot.lane.b32.xlu0 %v1930_v55, %s1683_s11  ;;  %917 = vrot.lane.b32.xlu1 %v1908_v50, %s1685_s13 }
 0x186   : > { %867 = vrot.lane.b32.xlu0 %v1934_v56, %s1684_s12  ;;  %941 = vrot.lane.b32.xlu1 %v765_v8, %s1686_s14 }
 0x18a   : > { %963 = vrot.lane.b32.xlu0 %v1872_v35, %s1681_s24  ;;  %965 = vrot.lane.b32.xlu1 %v1834_v2, %s1681_s24 }
 0x190   : > { %v884_v57 = vpop.permute.xlu0 %883  ;;  %v954_v9 = vpop.permute.xlu1 %953 }
 0x194   : > { %v798_v10 = vpop.permute.xlu1 %797  ;;  %v794_v11 = vpop.permute.xlu0 %793 }
 0x195   : > { %v977_v12 = vsel %vm975_vm4, %v765_v8, %v794_v11  ;;  %v979_v17 = vsel %vm975_vm4, %v1880_v37, %v798_v10  ;;  %v1042_v11 = vld [vmem:[%s2243_s3 + $0x20] sm:$0xff] }
 0x198   : > { %v886_v13 = vpop.permute.xlu1 %885  ;;  %v2067_v14 = vpop.permute.xlu0 %879 }
 0x19c   : > { %v882_v15 = vpop.permute.xlu1 %881  ;;  %v956_v16 = vpop.permute.xlu0 %955 }
 0x1a0   : > { %v830_v18 = vpop.permute.xlu1 %829  ;;  %v2071_v19 = vpop.permute.xlu0 %799 }
 0x1a1   : > { %v988_v2 = vsel %vm984_vm5, %v979_v17, %v830_v18 }
 0x1a4   : > { %v862_v20 = vpop.permute.xlu1 %861  ;;  %v2074_v21 = vpop.permute.xlu0 %951 }
 0x1a5   : > { %v997_v22 = vsel %vm993_vm6, %v988_v2, %v862_v20 }
 0x1a6   : > { %v1006_v23 = vsel %vm1002_vm7, %v997_v22, %v886_v13 }
 0x1a8   : > { %v796_v24 = vpop.permute.xlu0 %795  ;;  %v826_v25 = vpop.permute.xlu1 %825 }
 0x1a9   : > { %v986_v26 = vsel %vm984_vm5, %v977_v12, %v826_v25  ;;  %v978_v43 = vsel %vm975_vm4, %v1954_v60, %v796_v24 }
 0x1ac   : > { %v908_v27 = vpop.permute.xlu0 %907  ;;  %v858_v29 = vpop.permute.xlu1 %857 }
 0x1ad   : > { %v995_v30 = vsel %vm993_vm6, %v986_v26, %v858_v29  ;;  %v1045_v29 = vld [vmem:[%s2243_s3 + $0x38] sm:$0xff] }
 0x1ae   : > { %v1004_v31 = vsel %vm1002_vm7, %v995_v30, %v882_v15 }
 0x1b0   : > { %v932_v32 = vpop.permute.xlu0 %931  ;;  %v906_v33 = vpop.permute.xlu1 %905 }
 0x1b1   : > { %v1013_v34 = vsel %vm1011_vm8, %v1004_v31, %v906_v33  ;;  %v1040_v31 = vld [vmem:[%s2243_s3 + $0x10] sm:$0xff]  ;;  %v1043_v33 = vld [vmem:[%s2243_s3 + $0x28] sm:$0xff] }
 0x1b4   : > { %v904_v35 = vpop.permute.xlu0 %903  ;;  %v930_v36 = vpop.permute.xlu1 %929 }
 0x1b5   : > { %v1022_v37 = vsel %vm1020_vm9, %v1013_v34, %v930_v36 }
 0x1b6   : > { %v1031_v38 = vsel %vm1029_vm10, %v1022_v37, %v954_v9  ;;  %v1044_v9 = vld [vmem:[%s2243_s3 + $0x30] sm:$0xff] }
 0x1b8   : > { %v928_v39 = vpop.permute.xlu0 %927  ;;  %v2084_v40 = vpop.permute.xlu1 %961 }
 0x1bc   : > { %v828_v41 = vpop.permute.xlu0 %827  ;;  %v2086_v42 = vpop.permute.xlu1 %805 }
 0x1bd   : > { %v987_v44 = vsel %vm984_vm5, %v978_v43, %v828_v41  ;;  %v1056_v43 = vmul.f32 %v1040_v31, %v1031_v38 }
 0x1c0   : > { %v860_v45 = vpop.permute.xlu0 %859  ;;  %v958_v48 = vpop.permute.xlu1 %957 }
 0x1c1   : > { %v996_v49 = vsel %vm993_vm6, %v987_v44, %v860_v45  ;;  %v1059_v44 = vmul.f32 %v1043_v33, %v1894_v46 }
 0x1c2   : > { %v1005_v59 = vsel %vm1002_vm7, %v996_v49, %v884_v57 }
 0x1c3   : > { %v1014_v61 = vsel %vm1011_vm8, %v1005_v59, %v908_v27 }
 0x1c4   : > { %v1023_v62 = vsel %vm1020_vm9, %v1014_v61, %v932_v32  ;;  %v2095_v63 = vpop.permute.xlu0 %891  ;;  %v802_v0 = vpop.permute.xlu1 %801  ;;  %v1049_v61 = vld [vmem:[%s2243_s3 + $0x58] sm:$0xff] }
 0x1c5   : > { %v1032_v1 = vsel %vm1029_vm10, %v1023_v62, %v956_v16 }
 0x1c6   : > { %v1058_v16 = vmul.f32 %v1042_v11, %v1032_v1 }
 0x1c8   : > { %v888_v3 = vpop.permute.xlu0 %887  ;;  %v2098_v4 = vpop.permute.xlu1 %893 }
 0x1cc   : > { %v792_v60 = vpop.permute.xlu0 %791  ;;  %v890_v5 = vpop.permute.xlu1 %889 }
 0x1d0   : > { %v2100_v6 = vpop.permute.xlu0 %959  ;;  %v910_v7 = vpop.permute.xlu1 %909 }
 0x1d1   : > { %v1015_v8 = vsel %vm1011_vm8, %v1006_v23, %v910_v7  ;;  %v976_v23 = vsel %vm975_vm4, %v1918_v52, %v792_v60  ;;  %v1038_v52 = vld [vmem:[%s2243_s3] sm:$0xff]  ;;  %v1065_v60 = vmul.f32 %v1049_v61, %v1912_v51 }
 0x1d4   : > { %v2103_v57 = vpop.permute.xlu0 %803  ;;  %v934_v10 = vpop.permute.xlu1 %933 }
 0x1d5   : > { %v1024_v12 = vsel %vm1020_vm9, %v1015_v8, %v934_v10 }
 0x1d6   : > { %v1033_v13 = vsel %vm1029_vm10, %v1024_v12, %v958_v48 }
 0x1d7   : > { %v1060_v15 = vmul.f32 %v1044_v9, %v1033_v13 }
 0x1d8   : > { %v832_v17 = vpop.permute.xlu0 %831  ;;  %v824_v18 = vpop.permute.xlu1 %823 }
 0x1d9   : > { %v1072_v2 = vpack.c.bf16 %v1060_v15, %v1058_v16  ;;  %v985_v24 = vsel %vm984_vm5, %v976_v23, %v824_v18  ;;  %v1048_v15 = vld [vmem:[%s2243_s3 + $0x50] sm:$0xff] }
 0x1dc   : > { %v864_v20 = vpop.permute.xlu0 %863  ;;  %v838_v22 = vpop.permute.xlu1 %837 }
 0x1e0   : > { %v856_v25 = vpop.permute.xlu0 %855  ;;  %v870_v26 = vpop.permute.xlu1 %869 }
 0x1e1   : > { %v994_v27 = vsel %vm993_vm6, %v985_v24, %v856_v25 }
 0x1e2   : > { %v1003_v30 = vsel %vm1002_vm7, %v994_v27, %v2067_v14  ;;  %v1061_v14 = vmul.f32 %v1045_v29, %v1922_v53  ;;  %v1047_v53 = vld [vmem:[%s2243_s3 + $0x48] sm:$0xff]  ;;  %v982_v27 = vsel %vm975_vm4, %v1926_v54, %v2103_v57  ;;  %v1050_v57 = vld [vmem:[%s2243_s3 + $0x60] sm:$0xff] }
 0x1e3   : > { %v1012_v32 = vsel %vm1011_vm8, %v1003_v30, %v904_v35  ;;  %v1063_v7 = vmul.f32 %v1047_v53, %v1930_v55  ;;  %v1051_v55 = vld [vmem:[%s2243_s3 + $0x68] sm:$0xff]  ;;  %v1486_v53 = vld [vmem:[%s2245_s5] ss:$0 sm:$0xff] }
 0x1e4   : > { %v1021_v34 = vsel %vm1020_vm9, %v1012_v32, %v928_v39  ;;  %v2133_v36 = vpop.permute.xlu0 %915  ;;  %v834_v37 = vpop.permute.xlu1 %833  ;;  %v1073_v59 = vpack.c.bf16 %v1061_v14, %v1059_v44  ;;  %v980_v39 = vsel %vm975_vm4, %v1864_v28, %v2071_v19  ;;  %v1067_v24 = vmul.f32 %v1051_v55, %v1908_v50 }
 0x1e5   : > { %v1030_v41 = vsel %vm1029_vm10, %v1021_v34, %v2074_v21  ;;  %v981_v21 = vsel %vm975_vm4, %v1898_v47, %v802_v0  ;;  %v989_v46 = vsel %vm984_vm5, %v980_v39, %v832_v17  ;;  %v1075_v13 = vpack.c.bf16 %v1065_v60, %v1063_v7  ;;  %v1053_v17 = vld [vmem:[%s2243_s3 + $0x78] sm:$0xff] }
 0x1e6   : > { %v1054_v35 = vmul.f32 %v1038_v52, %v1030_v41  ;;  %v998_v38 = vsel %vm993_vm6, %v989_v46, %v864_v20  ;;  %v990_v62 = vsel %vm984_vm5, %v981_v21, %v834_v37  ;;  %v1690_v44 = vmov 0.0   ;;  %v1319_v39 = vld [vmem:[%s2247_s7 + $0x18] sm:$0xff] }
 0x1e7   : > { %v1007_v8 = vsel %vm1002_vm7, %v998_v38, %v888_v3  ;;  %1603 = vmatprep.mubr.msk.f32.mxu0 %vm1689_vm11, %v1690_v44 }
 0x1e8   : > { %v912_v45 = vpop.permute.xlu0 %911  ;;  %v866_v48 = vpop.permute.xlu1 %865  ;;  %v1070_v49 = vpack.c.bf16 %v1056_v43, %v1054_v35  ;;  %v1688_v35 = vmov 0.0|0.0  }
 0x1e9   : > { %v999_v28 = vsel %vm993_vm6, %v990_v62, %v866_v48  ;;  %v1016_v47 = vsel %vm1011_vm8, %v1007_v8, %v912_v45  ;;  %1606 = vmatprep.subr.bf16.mxu1 %v1688_v35  ;;  %1618 = vmatprep.subr.bf16.mxu0 %v1688_v35  ;;  %v1316_v45 = vld [vmem:[%s2247_s7] sm:$0xff]  ;;  %v1317_v48 = vld [vmem:[%s2247_s7 + $0x8] sm:$0xff] }
 0x1ea   : > { %1202 = vmatmul.mubr.bf16.vlgmr.msra.gmra.mrb[0].mxu1 %v1070_v49  ;;  %v1008_v0 = vsel %vm1002_vm7, %v999_v28, %v890_v5  ;;  %v1046_v5 = vld [vmem:[%s2243_s3 + $0x40] sm:$0xff]  ;;  %v1318_v49 = vld [vmem:[%s2247_s7 + $0x10] sm:$0xff] }
 0x1eb   : > { %1497 = vmatprep.mubr.msk.bf16.mxu1 %vm975_vm4, %v1073_v59  ;;  %v1619_v59 = vpack.c.bf16 %v1317_v48, %v1316_v45  ;;  %v1622_v61 = vpack.c.bf16 %v1319_v39, %v1318_v49 }
 0x1ec   : > { %v936_v19 = vpop.permute.xlu0 %935  ;;  %v914_v1 = vpop.permute.xlu1 %913 }
 0x1ed   : > { %v1025_v9 = vsel %vm1020_vm9, %v1016_v47, %v936_v19  ;;  %v1017_v10 = vsel %vm1011_vm8, %v1008_v0, %v914_v1  ;;  %1620 = vmatpush3.bf16.msra.mxu0 %v1619_v59 }
 0x1ee   : > { %v1034_v16 = vsel %vm1029_vm10, %v1025_v9, %v2100_v6  ;;  %v1069_v6 = vmul.f32 %v1053_v17, %v1945_v58  ;;  %1621 = vmatprep.subr.bf16.mxu0 %v1688_v35 }
 0x1ef   : > { %v1062_v25 = vmul.f32 %v1046_v5, %v1034_v16 }
 0x1f0   : > { %v940_v11 = vpop.permute.xlu0 %939  ;;  %v938_v12 = vpop.permute.xlu1 %937  ;;  %v1077_v52 = vpack.c.bf16 %v1069_v6, %v1067_v24 }
 0x1f1   : > { %v1026_v51 = vsel %vm1020_vm9, %v1017_v10, %v938_v12  ;;  %1623 = vmatpush3.bf16.msra.mxu0 %v1622_v61 }
 0x1f2   : > { %v1035_v3 = vsel %vm1029_vm10, %v1026_v51, %v2084_v40  ;;  %1210 = vmatmul.mubr.bf16.gmra.mrb[4].mxu1 %v1072_v2  ;;  %v983_v40 = vsel %vm975_vm4, %v1934_v56, %v2086_v42 }
 0x1f3   : > { %1498 = vmatprep.mubr.msk.bf16.mxu1 %vm975_vm4, %v1075_v13  ;;  %v1064_v18 = vmul.f32 %v1048_v15, %v1035_v3  ;;  %v992_v2 = vsel %vm984_vm5, %v983_v40, %v838_v22  ;;  %v1052_v22 = vld [vmem:[%s2243_s3 + $0x70] sm:$0xff] }
 0x1f4   : > { %v836_v20 = vpop.permute.xlu0 %835  ;;  %v918_v23 = vpop.permute.xlu1 %917  ;;  %v1001_v29 = vsel %vm993_vm6, %v992_v2, %v870_v26 }
 0x1f5   : > { %v991_v30 = vsel %vm984_vm5, %v982_v27, %v836_v20  ;;  %v1074_v50 = vpack.c.bf16 %v1064_v18, %v1062_v25  ;;  %v1010_v56 = vsel %vm1002_vm7, %v1001_v29, %v2098_v4 }
 0x1f6   : > { %v1019_v42 = vsel %vm1011_vm8, %v1010_v56, %v918_v23 }
 0x1f8   : > { %v868_v31 = vpop.permute.xlu0 %867  ;;  %v942_v32 = vpop.permute.xlu1 %941 }
 0x1f9   : > { %v1000_v33 = vsel %vm993_vm6, %v991_v30, %v868_v31  ;;  %v1028_v4 = vsel %vm1020_vm9, %v1019_v42, %v942_v32  ;;  %v1242_v32 = vld [vmem:[%s2246_s6] sm:$0x1] }
 0x1fa   : > { %v1009_v58 = vsel %vm1002_vm7, %v1000_v33, %v2095_v63  ;;  %1218 = vmatmul.mubr.bf16.gmra.mrb[8].mxu1 %v1074_v50  ;;  %v1320_v33 = vld [vmem:[%s2248_s8] sm:$0x1] }
 0x1fb   : > { %1499 = vmatprep.mubr.msk.bf16.mxu1 %vm975_vm4, %v1077_v52  ;;  %v1018_v54 = vsel %vm1011_vm8, %v1009_v58, %v2133_v36 }
 0x1fc   : > { %v1027_v63 = vsel %vm1020_vm9, %v1018_v54, %v940_v11  ;;  %v964_v26 = vpop.permute.xlu0 %963  ;;  %v966_v34 = vpop.permute.xlu1 %965 }
 0x1fd   : > { %v1036_v37 = vsel %vm1029_vm10, %v1027_v63, %v964_v26  ;;  %v1037_v14 = vsel %vm1029_vm10, %v1028_v4, %v966_v34 }
 0x1fe   : > { %v1066_v41 = vmul.f32 %v1050_v57, %v1036_v37  ;;  %v1068_v36 = vmul.f32 %v1052_v22, %v1037_v14 }
 0x200   : > { %v1076_v43 = vpack.c.bf16 %v1068_v36, %v1066_v41 }
 0x202   : > { %1226 = vmatmul.mubr.bf16.gmra.mrb[12].mxu1 %v1076_v43 }
 0x203   : > { %1592 = vmatprep.mubr.msk.f32.mxu1 %vm1689_vm11, %v1690_v44 }
 0x2bd   : > { %v1203_v21 = vpop.f32.mrb[0].mxu1 }
 0x2be   : > { %v1204_v46 = vadd.f32 %v1486_v53, %v1203_v21  ;;  %v1205_v38 = vpop.f32.mrb[1].mxu1 }
 0x2bf   : > { %v1206_v62 = vpop.f32.mrb[2].mxu1 }
 0x2c0   : > { %v1207_v28 = vadd.f32 %v1486_v53, %v1206_v62  ;;  %v1208_v19 = vpop.f32.mrb[3].mxu1  ;;  %v1234_v1 = vmax.f32 %v1204_v46, 0.0 }
 0x2c2   : > { %v1235_v60 = vmax.f32 %v1207_v28, 0.0 }
 0x2c4   : > { %v1607_v7 = vpack.c.bf16 %v1235_v60, %v1234_v1 }
 0x2c5   : > { %v1211_v8 = vpop.f32.mrb[4].mxu1 }
 0x2c6   : > { %v1212_v47 = vadd.f32 %v1486_v53, %v1211_v8  ;;  %v1213_v0 = vpop.f32.mrb[5].mxu1  ;;  %1608 = vmatpush3.bf16.msra.mxu1 %v1607_v7 }
 0x2c7   : > { %v1214_v9 = vpop.f32.mrb[6].mxu1  ;;  %1609 = vmatprep.subr.bf16.mxu1 %v1688_v35 }
 0x2c8   : > { %v1215_v10 = vadd.f32 %v1486_v53, %v1214_v9  ;;  %v1216_v11 = vpop.f32.mrb[7].mxu1  ;;  %v1236_v12 = vmax.f32 %v1212_v47, 0.0 }
 0x2ca   : > { %v1237_v13 = vmax.f32 %v1215_v10, 0.0 }
 0x2cc   : > { %v1610_v15 = vpack.c.bf16 %v1237_v13, %v1236_v12 }
 0x2cd   : > { %v1219_v51 = vpop.f32.mrb[8].mxu1 }
 0x2ce   : > { %v1220_v55 = vadd.f32 %v1486_v53, %v1219_v51  ;;  %v1221_v3 = vpop.f32.mrb[9].mxu1  ;;  %1611 = vmatpush3.bf16.msra.mxu1 %v1610_v15 }
 0x2cf   : > { %v1222_v5 = vpop.f32.mrb[10].mxu1  ;;  %1612 = vmatprep.subr.bf16.mxu1 %v1688_v35 }
 0x2d0   : > { %v1223_v16 = vadd.f32 %v1486_v53, %v1222_v5  ;;  %v1224_v17 = vpop.f32.mrb[11].mxu1  ;;  %v1238_v18 = vmax.f32 %v1220_v55, 0.0 }
 0x2d2   : > { %v1239_v20 = vmax.f32 %v1223_v16, 0.0 }
 0x2d4   : > { %v1613_v23 = vpack.c.bf16 %v1239_v20, %v1238_v18 }
 0x2d5   : > { %v1227_v24 = vpop.f32.mrb[12].mxu1 }
 0x2d6   : > { %v1228_v40 = vadd.f32 %v1486_v53, %v1227_v24  ;;  %v1229_v2 = vpop.f32.mrb[13].mxu1  ;;  %1614 = vmatpush3.bf16.msra.mxu1 %v1613_v23 }
 0x2d7   : > { %v1230_v25 = vpop.f32.mrb[14].mxu1  ;;  %1615 = vmatprep.subr.bf16.mxu1 %v1688_v35 }
 0x2d8   : > { %v1231_v6 = vadd.f32 %v1486_v53, %v1230_v25  ;;  %v1232_v27 = vpop.f32.mrb[15].mxu1  ;;  %v1240_v29 = vmax.f32 %v1228_v40, 0.0 }
 0x2da   : > { %v1241_v30 = vmax.f32 %v1231_v6, 0.0 }
 0x2dc   : > { %v1616_v31 = vpack.c.bf16 %v1241_v30, %v1240_v29 }
 0x2de   : > { %1617 = vmatpush3.bf16.msra.mxu1 %v1616_v31 }
 0x2e1   : > { %1593 = vmatmul.mubr.msk.f32.vlgmr.msra.gmra.mrb[16].mxu1 %vm1002_vm7, %v1242_v32 }
 0x3b4   : > { %v1312_v50 = vpop.f32.mrb[16].mxu1 }
 0x3b5   : > { %v1594_v52 = vpop.f32.mrb[17].mxu1  ;;  %1604 = vmatmul.mubr.msk.f32.vlgmr.msra.gmra.mrb[32].mxu0 %vm984_vm5, %v1312_v50 }
 0x488   : > { %v1390_v56 = vpop.f32.mrb[32].mxu0 }
 0x489   : > { %v1391_v58 = vadd.f32 %v1390_v56, %v1320_v33  ;;  %v1605_v42 = vpop.f32.mrb[33].mxu0 }
 0x48b   : > { %1395 = vst.msk [vmem:[%s328_s20] sm:$0x1] %vm1394_vm12, %v1391_v58 }
 0x48c PF: > { %s19_s30 = sadd.s32 1, %s1678_s30  }
 0x48d   : > { %p16_p4 = scmp.ge.s32.totalorder %s19_s30, 4  }
 0x48f   :  { %18 = sbr.rel (!%p16_p4) target bundleno = 1 (0x1), region = 86 }

</bundles_post_ra>
